<compile_context>
chip_gen: v7x
topology: tpu7x:2x2x1
jax: 0.10.0
libtpu: 0.0.40
codegen_flags: <defaults>
</compile_context>

<pallas_src>
import functools

import jax
import jax.numpy as jnp
from jax.experimental import pallas as pl
from jax.experimental.pallas import tpu as pltpu


def _backbone_head_kernel(patches_ref, w_emb_ref, b_emb_ref,
                          w_head_ref, b_head_ref, out_ref, acc_ref, *, inv_p):
    """Fused patch-embed + pooling-accumulate + head kernel.

    patches_ref : [TB, TP, Dp]  bf16 flattened image patches (one tile)
    w_emb_ref   : [Dp, F]       bf16 patch-embedding weight (whole, reused)
    b_emb_ref   : [1, F]        f32 patch-embedding bias
    w_head_ref  : [F, T_pad]    f32 head Linear weight (zero-padded, lane-dense)
    b_head_ref  : [1, T_pad]    f32 head Linear bias (zero-padded)
    out_ref     : [TB, T_pad]   f32 output tile (resident across patch axis)
    acc_ref     : [TB, F]       f32 pooled-sum accumulator scratch
    """
    p = pl.program_id(1)

    @pl.when(p == 0)
    def _init():
        acc_ref[...] = jnp.zeros_like(acc_ref)

    # --- backbone: patch embedding for this tile on the MXU ---
    tb, tp, dp = patches_ref.shape
    patch_tile = patches_ref[...].reshape(tb * tp, dp)           # layout no-op (tp % 8 == 0)
    feats = jnp.dot(patch_tile, w_emb_ref[...],
                    preferred_element_type=jnp.float32)          # [TB*TP, F] f32
    # --- backbone: partial sum over patch axis (global-average-pool numerator) ---
    acc_ref[...] += feats.reshape(tb, tp, -1).sum(axis=1)

    @pl.when(p == pl.num_programs(1) - 1)
    def _finalize():
        # mean over all P patches; bias added once post-pool (mean is linear).
        pooled = acc_ref[...] * inv_p + b_emb_ref[...]
        # --- head: Dropout(0.3) is identity in eval mode; Linear(F, target_size) ---
        out_ref[...] = (jnp.dot(pooled, w_head_ref[...],
                                preferred_element_type=jnp.float32)
                        + b_head_ref[...])


def _pick_tile(n, target, align):
    """Largest divisor of n that is a multiple of `align` and <= target; else n."""
    if n % align != 0:
        return n
    best = None
    d = align
    while d <= min(n, target):
        if n % d == 0:
            best = d
        d += align
    return best if best is not None else n


def custom_model_forward(x, params, *, patch_size=16, tile_b=None, tile_p=None):
    """x: NCHW float32. params: (w_emb [Dp,F], b_emb [F], w_head [F,T], b_head [T])."""
    B, C, H, W = x.shape
    ph = pw = patch_size
    assert H % ph == 0 and W % pw == 0
    P = (H // ph) * (W // pw)
    Dp = C * ph * pw

    # im2col glue (plain JAX): NCHW -> [B, P, Dp]  (per-patch row-major flatten,
    # matching nn.Unfold / ViT patch embedding).
    patches = x.reshape(B, C, H // ph, ph, W // pw, pw)
    patches = patches.transpose(0, 2, 4, 1, 3, 5).reshape(B, P, Dp)

    w_emb, b_emb, w_head, b_head = params
    F_ = w_emb.shape[1]
    T = w_head.shape[1]
    T_pad = ((T + 127) // 128) * 128          # lane-dense padded head width

    # Pad head params to lane-dense width (extra columns are zero).
    w_head_p = jnp.zeros((F_, T_pad), jnp.float32).at[:, :T].set(w_head.astype(jnp.float32))
    b_head_p = jnp.zeros((1, T_pad), jnp.float32).at[:, :T].set(
        b_head.reshape(1, T).astype(jnp.float32))

    # Tile sizes: batch axis is "parallel", patch axis is the reduction ("arbitrary").
    if tile_b is None:
        tile_b = B if B % 8 != 0 else _pick_tile(B, 64, 8)
    if tile_p is None:
        tile_p = _pick_tile(P, 512, 8)
    assert B % tile_b == 0 and P % tile_p == 0, (B, tile_b, P, tile_p)
    grid = (B // tile_b, P // tile_p)

    kernel = functools.partial(_backbone_head_kernel, inv_p=1.0 / P)

    bytes_accessed = (B * P * Dp * 2          # bf16 patches
                      + Dp * F_ * 2           # bf16 patch-embed weight
                      + F_ * 4                # patch-embed bias
                      + F_ * T_pad * 4 + T_pad * 4
                      + B * T_pad * 4)        # output
    cost = pl.CostEstimate(flops=2 * B * P * Dp * F_ + 2 * B * F_ * T_pad,
                           transcendentals=0,
                           bytes_accessed=bytes_accessed)

    out_padded = pl.pallas_call(
        kernel,
        out_shape=jax.ShapeDtypeStruct((B, T_pad), jnp.float32),
        grid_spec=pltpu.PrefetchScalarGridSpec(
            num_scalar_prefetch=0,
            grid=grid,
            in_specs=[
                pl.BlockSpec((tile_b, tile_p, Dp), lambda b, p: (b, p, 0)),  # patches
                pl.BlockSpec((Dp, F_), lambda b, p: (0, 0)),                 # w_emb
                pl.BlockSpec((1, F_), lambda b, p: (0, 0)),                  # b_emb
                pl.BlockSpec((F_, T_pad), lambda b, p: (0, 0)),              # w_head
                pl.BlockSpec((1, T_pad), lambda b, p: (0, 0)),               # b_head
            ],
            out_specs=pl.BlockSpec((tile_b, T_pad), lambda b, p: (b, 0)),    # resident over p
            scratch_shapes=[pltpu.VMEM((tile_b, F_), jnp.float32)],
        ),
        compiler_params=pltpu.CompilerParams(
            dimension_semantics=("parallel", "arbitrary"),
            vmem_limit_bytes=32 * 1024 * 1024,
        ),
        cost_estimate=cost,
    )(patches.astype(jnp.bfloat16),
      w_emb.astype(jnp.bfloat16),
      b_emb.reshape(1, F_).astype(jnp.float32),
      w_head_p,
      b_head_p)

    return out_padded[:, :T]


def _reference_forward(x, params, *, patch_size=16):
    """Pure-JAX reference (same bf16 casts on the MXU operands) for a sanity check."""
    B, C, H, W = x.shape
    ph = pw = patch_size
    P = (H // ph) * (W // pw)
    Dp = C * ph * pw
    patches = x.reshape(B, C, H // ph, ph, W // pw, pw)
    patches = patches.transpose(0, 2, 4, 1, 3, 5).reshape(B, P, Dp)
    w_emb, b_emb, w_head, b_head = params
    p_bf = patches.astype(jnp.bfloat16).astype(jnp.float32)
    w_bf = w_emb.astype(jnp.bfloat16).astype(jnp.float32)
    feats = jnp.einsum('bpd,df->bpf', p_bf, w_bf)
    pooled = feats.mean(axis=1) + b_emb
    return pooled @ w_head + b_head


if __name__ == "__main__":
    # Small shapes consistent with the module's forward (NCHW images).
    B, C, H, W = 2, 3, 64, 64          # -> P = 16 patches/image, Dp = 768
    PATCH = 16
    N_FEATURES = 128                   # backbone feature dim (self.n_features)
    TARGET_SIZE = 1                    # nn.Linear(n_features, target_size=1)
    D_PATCH = C * PATCH * PATCH

    key = jax.random.PRNGKey(0)
    kx, k1, k2, k3, k4 = jax.random.split(key, 5)

    x = jax.random.normal(kx, (B, C, H, W), dtype=jnp.float32)

    # Deterministic synthetic parameters (no checkpoint loading).
    w_emb = jax.random.normal(k1, (D_PATCH, N_FEATURES), dtype=jnp.float32) * 0.02
    b_emb = jax.random.normal(k2, (N_FEATURES,), dtype=jnp.float32) * 0.02
    w_head = jax.random.normal(k3, (N_FEATURES, TARGET_SIZE), dtype=jnp.float32) * 0.02
    b_head = jax.random.normal(k4, (TARGET_SIZE,), dtype=jnp.float32) * 0.02
    params = (w_emb, b_emb, w_head, b_head)

    ref = _reference_forward(x, params, patch_size=PATCH)

    # tile_p=8 -> 2 reduction steps over the patch axis (exercises the accumulator path).
    out = custom_model_forward(x, params, patch_size=PATCH, tile_p=8)
    out = jax.block_until_ready(out)
    assert out.shape == (B, TARGET_SIZE), out.shape
    assert jnp.allclose(out, ref, atol=2e-3, rtol=2e-3), (out, ref)

    # Default tiling (single patch block per image) -> exercises the one-step path.
    out2 = custom_model_forward(x, params, patch_size=PATCH)
    out2 = jax.block_until_ready(out2)
    assert jnp.allclose(out2, ref, atol=2e-3, rtol=2e-3), (out2, ref)

    print("KERNEL_OK")
</pallas_src>

<mosaic_0001>
module attributes {stable_mosaic.version = 11 : i64} {
  func.func @_backbone_head_kernel(%arg0: i32, %arg1: i32, %arg2: memref<2x8x768xbf16, #tpu.memory_space<vmem>>, %arg3: memref<768x128xbf16, #tpu.memory_space<vmem>>, %arg4: memref<1x128xf32, #tpu.memory_space<vmem>>, %arg5: memref<128x128xf32, #tpu.memory_space<vmem>>, %arg6: memref<1x128xf32, #tpu.memory_space<vmem>>, %arg7: memref<2x128xf32, #tpu.memory_space<vmem>>, %arg8: memref<2x128xf32, #tpu.memory_space<vmem>>) attributes {dimension_semantics = [#tpu.dimension_semantics<parallel>, #tpu.dimension_semantics<arbitrary>], iteration_bounds = array<i64: 1, 2>, scalar_prefetch = 0 : i64, scratch_operands = 1 : i64, tpu.core_type = #tpu.core_type<tc>, window_params = [{transform_indices = @transform_0, window_bounds = array<i64: 2, 8, 768>}, {pipeline_mode = #tpu.pipeline_mode<synchronous>, transform_indices = @transform_1, window_bounds = array<i64: 768, 128>}, {pipeline_mode = #tpu.pipeline_mode<synchronous>, transform_indices = @transform_2, window_bounds = array<i64: 1, 128>}, {pipeline_mode = #tpu.pipeline_mode<synchronous>, transform_indices = @transform_3, window_bounds = array<i64: 128, 128>}, {pipeline_mode = #tpu.pipeline_mode<synchronous>, transform_indices = @transform_4, window_bounds = array<i64: 1, 128>}, {transform_indices = @transform_5, window_bounds = array<i64: 2, 128>}]} {
    %c0_i32 = arith.constant 0 : i32
    %0 = arith.cmpi eq, %arg1, %c0_i32 : i32
    %1 = arith.extui %0 : i1 to i32
    %c0_i32_0 = arith.constant 0 : i32
    %2 = arith.cmpi ne, %1, %c0_i32_0 : i32
    scf.if %2 {
      %cst_11 = arith.constant 0.000000e+00 : f32
      %15 = vector.broadcast %cst_11 : f32 to vector<2x128xf32>
      %c0_12 = arith.constant 0 : index
      %c0_13 = arith.constant 0 : index
      %16 = vector.load %arg8[%c0_12, %c0_13] : memref<2x128xf32, #tpu.memory_space<vmem>>, vector<2x128xf32>
      tpu.vector_store %arg8[%c0_12, %c0_13], %15 {strides = array<i32>} : memref<2x128xf32, #tpu.memory_space<vmem>>, vector<2x128xf32>,
    } else {
    }
    %c0 = arith.constant 0 : index
    %c0_1 = arith.constant 0 : index
    %c0_2 = arith.constant 0 : index
    %3 = vector.load %arg2[%c0, %c0_1, %c0_2] : memref<2x8x768xbf16, #tpu.memory_space<vmem>>, vector<2x8x768xbf16>
    %4 = vector.shape_cast %3 : vector<2x8x768xbf16> to vector<16x768xbf16>
    %c0_3 = arith.constant 0 : index
    %c0_4 = arith.constant 0 : index
    %5 = vector.load %arg3[%c0_3, %c0_4] : memref<768x128xbf16, #tpu.memory_space<vmem>>, vector<768x128xbf16>
    %cst = arith.constant dense<0.000000e+00> : vector<16x128xf32>
    %6 = tpu.matmul %4, %5, %cst {dimension_numbers = #tpu.dot_dimension_numbers<[1], [0], [0], [1], [0, 0, 1, 1], [], []>} : vector<16x768xbf16>, vector<768x128xbf16>, vector<16x128xf32> -> vector<16x128xf32>
    %c0_5 = arith.constant 0 : index
    %c0_6 = arith.constant 0 : index
    %7 = vector.load %arg8[%c0_5, %c0_6] : memref<2x128xf32, #tpu.memory_space<vmem>>, vector<2x128xf32>
    %8 = vector.shape_cast %6 : vector<16x128xf32> to vector<2x8x128xf32>
    %cst_7 = arith.constant dense<0.000000e+00> : vector<2x128xf32>
    %9 = vector.multi_reduction <add>, %8, %cst_7 [1] : vector<2x8x128xf32> to vector<2x128xf32>
    %10 = arith.addf %7, %9 : vector<2x128xf32>
    %c0_8 = arith.constant 0 : index
    %c0_9 = arith.constant 0 : index
    %11 = vector.load %arg8[%c0_8, %c0_9] : memref<2x128xf32, #tpu.memory_space<vmem>>, vector<2x128xf32>
    tpu.vector_store %arg8[%c0_8, %c0_9], %10 {strides = array<i32>} : memref<2x128xf32, #tpu.memory_space<vmem>>, vector<2x128xf32>,
    %c1_i32 = arith.constant 1 : i32
    %12 = arith.cmpi eq, %arg1, %c1_i32 : i32
    %13 = arith.extui %12 : i1 to i32
    %c0_i32_10 = arith.constant 0 : i32
    %14 = arith.cmpi ne, %13, %c0_i32_10 : i32
    scf.if %14 {
      %c0_11 = arith.constant 0 : index
      %c0_12 = arith.constant 0 : index
      %15 = vector.load %arg8[%c0_11, %c0_12] : memref<2x128xf32, #tpu.memory_space<vmem>>, vector<2x128xf32>
      %cst_13 = arith.constant 6.250000e-02 : f32
      %16 = vector.broadcast %cst_13 : f32 to vector<2x128xf32>
      %17 = arith.mulf %15, %16 : vector<2x128xf32>
      %c0_14 = arith.constant 0 : index
      %c0_15 = arith.constant 0 : index
      %18 = vector.load %arg4[%c0_14, %c0_15] : memref<1x128xf32, #tpu.memory_space<vmem>>, vector<1x128xf32>
      %19 = vector.broadcast %18 : vector<1x128xf32> to vector<2x128xf32>
      %20 = arith.addf %17, %19 : vector<2x128xf32>
      %c0_16 = arith.constant 0 : index
      %c0_17 = arith.constant 0 : index
      %21 = vector.load %arg5[%c0_16, %c0_17] : memref<128x128xf32, #tpu.memory_space<vmem>>, vector<128x128xf32>
      %cst_18 = arith.constant dense<0.000000e+00> : vector<2x128xf32>
      %22 = tpu.matmul %20, %21, %cst_18 {dimension_numbers = #tpu.dot_dimension_numbers<[1], [0], [0], [1], [0, 0, 1, 1], [], []>} : vector<2x128xf32>, vector<128x128xf32>, vector<2x128xf32> -> vector<2x128xf32>
      %c0_19 = arith.constant 0 : index
      %c0_20 = arith.constant 0 : index
      %23 = vector.load %arg6[%c0_19, %c0_20] : memref<1x128xf32, #tpu.memory_space<vmem>>, vector<1x128xf32>
      %24 = vector.broadcast %23 : vector<1x128xf32> to vector<2x128xf32>
      %25 = arith.addf %22, %24 : vector<2x128xf32>
      %c0_21 = arith.constant 0 : index
      %c0_22 = arith.constant 0 : index
      %26 = vector.load %arg7[%c0_21, %c0_22] : memref<2x128xf32, #tpu.memory_space<vmem>>, vector<2x128xf32>
      tpu.vector_store %arg7[%c0_21, %c0_22], %25 {strides = array<i32>} : memref<2x128xf32, #tpu.memory_space<vmem>>, vector<2x128xf32>,
    } else {
    }
    return
  }
  func.func @transform_0(%arg0: i32, %arg1: i32) -> (i32, i32, i32) {
    %c0_i32 = arith.constant 0 : i32
    %c0_i32_0 = arith.constant 0 : i32
    return %arg0, %arg1, %c0_i32 : i32, i32, i32
  }
  func.func @transform_1(%arg0: i32, %arg1: i32) -> (i32, i32) {
    %c0_i32 = arith.constant 0 : i32
    %c0_i32_0 = arith.constant 0 : i32
    %c0_i32_1 = arith.constant 0 : i32
    return %c0_i32, %c0_i32_0 : i32, i32
  }
  func.func @transform_2(%arg0: i32, %arg1: i32) -> (i32, i32) {
    %c0_i32 = arith.constant 0 : i32
    %c0_i32_0 = arith.constant 0 : i32
    %c0_i32_1 = arith.constant 0 : i32
    return %c0_i32, %c0_i32_0 : i32, i32
  }
  func.func @transform_3(%arg0: i32, %arg1: i32) -> (i32, i32) {
    %c0_i32 = arith.constant 0 : i32
    %c0_i32_0 = arith.constant 0 : i32
    %c0_i32_1 = arith.constant 0 : i32
    return %c0_i32, %c0_i32_0 : i32, i32
  }
  func.func @transform_4(%arg0: i32, %arg1: i32) -> (i32, i32) {
    %c0_i32 = arith.constant 0 : i32
    %c0_i32_0 = arith.constant 0 : i32
    %c0_i32_1 = arith.constant 0 : i32
    return %c0_i32, %c0_i32_0 : i32, i32
  }
  func.func @transform_5(%arg0: i32, %arg1: i32) -> (i32, i32) {
    %c0_i32 = arith.constant 0 : i32
    %c0_i32_0 = arith.constant 0 : i32
    return %arg0, %c0_i32 : i32, i32
  }
}

</mosaic_0001>

<bundles_post_ra>
// kernel: tpu_custom_call.1
= control target key start
LH: loop header
LB: loop body
LE: loop exit
PB: predicated region body
PF: predicated region fallthrough
CT: control target
= control target key end

     0   :  { %10 = vsyncpa [#allocation4], 0  ;;  %s1877_s0 = inlined_call_operand.hbm [shape: bf16[2,16,768], index: 0, kind: input, shape index: {}]   ;;  %s1878_s1 = inlined_call_operand.hbm [shape: bf16[768,128], index: 1, kind: input, shape index: {}]   ;;  %s1879_s2 = inlined_call_operand.vmem [shape: f32[1,128], index: 2, kind: input, shape index: {}]   ;;  %s1880_s3 = inlined_call_operand.hbm [shape: f32[128,128], index: 3, kind: input, shape index: {}]   ;;  %s1881_s4 = inlined_call_operand.vmem [shape: f32[1,128], index: 4, kind: input, shape index: {}]   ;;  %s1882_s5 = inlined_call_operand.hbm [shape: f32[2,128], index: 5, kind: output, shape index: {}]  }
   0x1   :  { %12 = vsyncpa [#allocation4 + $0x1], 0 }
   0x2   :  { %13 = vsyncpa [#allocation7], 0 }
   0x3   :  { %14 = vsyncpa [#allocation5], 0  ;;  %s1636_s18 = smov 0   ;;  %s1638_s19 = smov 0  }
   0x4   :  { %s1640_s20 = smov 0   ;;  %s1642_s21 = smov 0  }
   0x5   :  { %s1644_s22 = smov 0   ;;  %s1646_s23 = smov 0  }
   0x6 LB: > { %s1052_s24 = sadd.s32 4294967295, %s1589_s23   ;;  %s41_s25 = sadd.s32 1, %s1577_s20  ;;  %s1589_s23 = sphi %s1646_s23, %s20_s23   ;;  %s1585_s22 = sphi %s1644_s22, %s1899_s22   ;;  %s1581_s21 = sphi %s1642_s21, %s1898_s21   ;;  %s1577_s20 = sphi %s1640_s20, %s1897_s20   ;;  %s1573_s19 = sphi %s1638_s19, %s1896_s19   ;;  %s1569_s18 = sphi %s1636_s18, %s1895_s18  }
   0x7   : > { %p48_p0 = scmp.ne.s32.totalorder %s1577_s20, %s1573_s19  ;;  %p49_p1 = scmp.eq.s32.totalorder %s1589_s23, 0 }
   0x8   : > { %p54_p2 = scmp.ne.s32.totalorder %s1573_s19, %s1569_s18  ;;  %p1672_p3 = scmp.eq.s32.totalorder %s1052_s24, 0 }
   0x9   : > { %p50_p4 = por %p49_p1, %p48_p0  ;;  %p1053_p5 = scmp.ge.s32.totalorder %s1589_s23, 1 }
   0xa   : > { %s1886_s26 = scalar_select %p1672_p3, 1, 0 }
   0xb   : > { %p1679_p6 = por %p1672_p3, %p54_p2  ;;  %p175_p7 = scmp.lt.s32.totalorder %s1589_s23, 3 }
   0xc   : > { %s1591_s29 = smov [#allocation6]   ;;  %p1295_p10 = scmp.lt.s32.totalorder %s1589_s23, 2 }
   0xd   : > { %s1887_s27 = scalar_select %p1679_p6, 1, 0 }
   0xe   : > { %p1684_p8 = pnand %p1053_p5, %p175_p7  ;;  %s187_s30 = sshll.u32 %s1591_s29, 4  ;;  %s1688_s30 = int_to_ptr.vmem [resolvable:$true] %s187_s30 }
   0xf   : > { %p1699_p12 = pnand %p1295_p10, %p50_p4  ;;  %s1592_s8 = smov [#allocation8]  }
  0x10   : > { %p1282_p9 = pneg %p1684_p8  ;;  %s203_s9 = sshll.u32 %s1592_s8, 4  ;;  %s1703_s9 = int_to_ptr.vmem [resolvable:$true] %s203_s9 }
  0x11   : > { %s1419_s12 = scalar_lea.hbm %s1878_s1, 6144 }
  0x12   : > { %p1695_p11 = pnand %p1282_p9, %p1672_p3  ;;  %p1420_p13 = scmp.ne.s32.totalorder %s1878_s1, %s1419_s12 }
  0x13   : > { %p1426_p4 = scmp.lt.u32.totalorder %s1419_s12, %s1878_s1 }
  0x14   : > { %p1421_p0 = pneg %p1695_p11 }
  0x16   : > { %p1422_p1 = pnand %p1421_p0, %p1420_p13 }
  0x18   : > { %p1423_p2 = pneg %p1422_p1 }
  0x1a   : > { %p1428_p5 = pnand %p1426_p4, %p1423_p2 }
  0x1c   : > { %1431 = shalt.err (!%p1428_p5)
}
  0x1d   : > { %s1432_s17 = scalar_lea.vmem %s1688_s30, 6144  ;;  %p1440_p3 = scmp.lt.s32.totalorder %s1688_s30, %s1688_s30 }
  0x1e   : > { %p1433_p7 = scmp.ne.s32.totalorder %s1688_s30, %s1432_s17  ;;  %p1441_p13 = scmp.lt.s32.totalorder %s1432_s17, %s1432_s17 }
  0x20   : > { %p1435_p9 = pnand %p1433_p7, %p1421_p0  ;;  %p1442_p1 = por %p1441_p13, %p1440_p3 }
  0x22   : > { %p1436_p10 = pneg %p1435_p9 }
  0x24   : > { %p1443_p6 = pnand %p1442_p1, %p1436_p10 }
  0x26   : > { %1446 = shalt.err (!%p1443_p6)
}
  0x27   : > { %s1593_s18 = smov 64   ;;  %s1594_s29 = smov 4  }
  0x28   : > { %1285 = dma.hbm_to_vmem [thread:$0]  (!%p1695_p11), %s1878_s1, 6144, %s1688_s30, [#allocation7], %s1593_s18, %s1593_s18, %s1594_s29  }
  0x29   : > { %s1447_s13 = scalar_lea.hbm %s1880_s3, 2048 }
  0x2a   : > { %p1448_p3 = scmp.ne.s32.totalorder %s1880_s3, %s1447_s13  ;;  %p1454_p4 = scmp.lt.u32.totalorder %s1447_s13, %s1880_s3 }
  0x2c   : > { %p1450_p6 = pnand %p1448_p3, %p1421_p0 }
  0x2e   : > { %p1451_p2 = pneg %p1450_p6 }
  0x30   : > { %p1456_p5 = pnand %p1454_p4, %p1451_p2 }
  0x32   : > { %1459 = shalt.err (!%p1456_p5)
}
  0x33   : > { %s1460_s30 = scalar_lea.vmem %s1703_s9, 2048  ;;  %p1468_p13 = scmp.lt.s32.totalorder %s1703_s9, %s1703_s9 }
  0x34   : > { %p1461_p7 = scmp.ne.s32.totalorder %s1703_s9, %s1460_s30  ;;  %p1469_p1 = scmp.lt.s32.totalorder %s1460_s30, %s1460_s30 }
  0x36   : > { %p1463_p9 = pnand %p1461_p7, %p1421_p0  ;;  %p1470_p3 = por %p1469_p1, %p1468_p13 }
  0x38   : > { %p1464_p10 = pneg %p1463_p9 }
  0x3a   : > { %p1471_p6 = pnand %p1470_p3, %p1464_p10 }
  0x3c   : > { %1474 = shalt.err (!%p1471_p6)
}
  0x3d   : > { %s1595_s18 = smov 128   ;;  %s1596_s29 = smov 8  }
  0x3e   : > { %1288 = dma.hbm_to_vmem [thread:$0]  (!%p1695_p11), %s1880_s3, 2048, %s1703_s9, [#allocation7], %s1595_s18, %s1595_s18, %s1596_s29  }
  0x3f   : > { %s220_s11 = sand.u32 1, %s1577_s20   ;;  %s29_s12 = sadd.s32 1, %s1585_s22 }
  0x40   : > { %p30_p0 = scmp.ge.s32.totalorder %s29_s12, 2  ;;  %s1265_s13 = smul.u32 48, %s220_s11 }
  0x41   : > { %s1266_s14 = smul.u32 384, %s1585_s22  ;;  %s1776_s29 = scalar_lea.sflag [#allocation4], %s220_s11 }
  0x42   : > { %s1901_s12 = smov (%p30_p0, %s29_s12), 0  ;;  %s224_s9 = scalar_lea.vmem [#allocation3], %s1265_s13 }
  0x43   : > { %s1765_s17 = scalar_lea.hbm %s1877_s0, %s1266_s14  ;;  %s37_s6 = ssub.s32 %s1585_s22, %s1901_s12 }
  0x44   : > { %s234_s30 = sshll.u32 %s224_s9, 4  ;;  %p39_p11 = scmp.eq.s32.totalorder %s37_s6, 0  ;;  %s1769_s30 = int_to_ptr.vmem [resolvable:$true] %s234_s30 }
  0x45   : > { %s1475_s8 = scalar_lea.hbm %s1765_s17, 768  ;;  %p1477_p4 = pneg %p1699_p12 }
  0x46   : > { %s1774_s18 = scalar_select %p39_p11, %s1577_s20, %s41_s25  }
  0x47   : > { %p1476_p2 = scmp.ne.s32.totalorder %s1765_s17, %s1475_s8  ;;  %s1480_s13 = scalar_lea.hbm %s1877_s0, 1536 }
  0x48   : > { %p1481_p9 = scmp.lt.u32.totalorder %s1765_s17, %s1877_s0  ;;  %p1482_p10 = scmp.lt.u32.totalorder %s1480_s13, %s1475_s8 }
  0x49   : > { %p1478_p5 = pnand %p1477_p4, %p1476_p2  ;;  %p1484_p1 = scmp.lt.u32.totalorder %s1475_s8, %s1765_s17 }
  0x4a   : > { %p1483_p13 = por %p1482_p10, %p1481_p9 }
  0x4b   : > { %p1479_p7 = pneg %p1478_p5 }
  0x4c   : > { %p1485_p3 = por %p1484_p1, %p1483_p13 }
  0x4e   : > { %p1486_p6 = pnand %p1485_p3, %p1479_p7 }
  0x50   : > { %1489 = shalt.err (!%p1486_p6)
}
  0x51   : > { %s1490_s25 = scalar_lea.vmem %s1769_s30, 768  ;;  %s1597_s11 = smov [#allocation3]  }
  0x52   : > { %p1491_p0 = scmp.ne.s32.totalorder %s1769_s30, %s1490_s25  ;;  %s1495_s6 = sshll.u32 %s1597_s11, 4  ;;  %s1496_s6 = int_to_ptr.vmem [resolvable:$false] %s1495_s6 }
  0x53   : > { %s1497_s9 = scalar_lea.vmem %s1496_s6, 1536  ;;  %p1498_p5 = scmp.lt.s32.totalorder %s1769_s30, %s1496_s6 }
  0x54   : > { %p1493_p11 = pnand %p1491_p0, %p1477_p4  ;;  %p1499_p9 = scmp.lt.s32.totalorder %s1497_s9, %s1490_s25 }
  0x56   : > { %p1494_p2 = pneg %p1493_p11  ;;  %p1500_p10 = por %p1499_p9, %p1498_p5 }
  0x58   : > { %p1501_p13 = pnand %p1500_p10, %p1494_p2 }
  0x5a   : > { %1504 = shalt.err (!%p1501_p13)
}
  0x5b   : > { %s1598_s8 = smov 768   ;;  %s1599_s10 = smov 384  }
  0x5c   : > { %s1600_s14 = smov 24   ;;  %246 = sbr.rel (%p1684_p8) target bundleno = 664 (0x298), region = 40 }
  0x5d   : > { %1292 = dma.hbm_to_vmem [thread:$0]  (!%p1699_p12), %s1765_s17, 768, %s1769_s30, %s1776_s29, %s1598_s8, %s1599_s10, %s1600_s14  }
  0x5e   : > { %s248_s13 = sand.u32 (!%p1684_p8), 1, %s1573_s19   ;;  %p1891_p4 = scmp.ne.s32.totalorder (!%p1684_p8), %s1887_s27, 0 }
  0x5f   : > { %s1267_s15 = smul.u32 (!%p1684_p8), 48, %s248_s13  ;;  %s249_s16 = scalar_lea.sflag (!%p1684_p8), [#allocation4], %s248_s13 }
  0x61   : > { %s1807_s25 = scalar_lea.vmem (!%p1684_p8), [#allocation3], %s1267_s15 }
  0x63   : > { %1556 = dma.done.wait (%p1891_p4), %s249_s16, 768  }
  0x64   : > { %1558 = vsyncadd (%p1891_p4), %s249_s16, 4294966528  ;;  %p1892_p7 = scmp.ne.s32.totalorder %s1886_s26, 0 }
  0x66   : > { %1560 = dma.done.wait (%p1892_p7), [#allocation7], 8192  }
  0x67   : > { %1562 = vsyncadd (%p1892_p7), [#allocation7], 4294959104  ;;  %p1061_p8 = scmp.ne.s32.totalorder %s1581_s21, 0 }
  0x68   : > { %v1601_v0 = vmov (!%p1061_p8), 0.0  }
  0x69   : > { %287 = sbr.rel (%p1061_p8) target bundleno = 112 (0x70), region = 56  ;;  %288 = vst [vmem:[#allocation2] sm:$0x3] (!%p1061_p8), %v1601_v0 }
  0x70 PF: > { %v1362_v1 = vld [vmem:[#allocation6 + $0x40] sm:$0xff]   ;;  %v1366_v5 = vld [vmem:[#allocation6 + $0x48] sm:$0xff]   ;;  %v1370_v9 = vld [vmem:[#allocation6 + $0x50] sm:$0xff]   ;;  %vm847_vm0 = vcmask 1041409   ;;  %p1116_p12 = scmp.ne.s32.totalorder %s1581_s21, 1 }
  0x71   : > { %v1363_v2 = vld [vmem:[#allocation6 + $0xc0] sm:$0xff]   ;;  %1123 = vmatprep.subr.bf16.mxu0 %v1362_v1  ;;  %v1367_v6 = vld [vmem:[#allocation6 + $0xc8] sm:$0xff]   ;;  %v1371_v10 = vld [vmem:[#allocation6 + $0xd0] sm:$0xff]   ;;  %vm1603_vm1 = vmmov (!%p1116_p12), 0  }
  0x72   : > { %v1364_v3 = vld [vmem:[#allocation6] sm:$0xff]   ;;  %1145 = vmatprep.subr.bf16.mxu1 %v1363_v2  ;;  %v1368_v7 = vld [vmem:[#allocation6 + $0x8] sm:$0xff]   ;;  %v1372_v11 = vld [vmem:[#allocation6 + $0x10] sm:$0xff]  }
  0x73   : > { %v1365_v4 = vld [vmem:[#allocation6 + $0x80] sm:$0xff]   ;;  %1124 = vmatpush3.bf16.msra.mxu0 %v1364_v3  ;;  %v1369_v8 = vld [vmem:[#allocation6 + $0x88] sm:$0xff]   ;;  %v1373_v12 = vld [vmem:[#allocation6 + $0x90] sm:$0xff]  }
  0x74   : > { %1146 = vmatpush3.bf16.msra.mxu1 %v1365_v4  ;;  %1125 = vmatprep.subr.bf16.mxu0 %v1366_v5  ;;  %v1374_v13 = vld [vmem:[#allocation6 + $0x58] sm:$0xff]   ;;  %v1378_v17 = vld [vmem:[#allocation6 + $0x60] sm:$0xff]   ;;  %v1382_v21 = vld [vmem:[#allocation6 + $0x68] sm:$0xff]  }
  0x75   : > { %1147 = vmatprep.subr.bf16.mxu1 %v1367_v6  ;;  %v1375_v14 = vld [vmem:[#allocation6 + $0xd8] sm:$0xff]   ;;  %v1379_v18 = vld [vmem:[#allocation6 + $0xe0] sm:$0xff]   ;;  %v1383_v22 = vld [vmem:[#allocation6 + $0xe8] sm:$0xff]  }
  0x76   : > { %v1376_v15 = vld [vmem:[#allocation6 + $0x18] sm:$0xff]   ;;  %v1380_v19 = vld [vmem:[#allocation6 + $0x20] sm:$0xff]   ;;  %v1384_v23 = vld [vmem:[#allocation6 + $0x28] sm:$0xff]  }
  0x77   : > { %1126 = vmatpush3.bf16.msra.mxu0 %v1368_v7  ;;  %v1377_v16 = vld [vmem:[#allocation6 + $0x98] sm:$0xff]   ;;  %v1381_v20 = vld [vmem:[#allocation6 + $0xa0] sm:$0xff]   ;;  %v1385_v24 = vld [vmem:[#allocation6 + $0xa8] sm:$0xff]  }
  0x78   : > { %1148 = vmatpush3.bf16.msra.mxu1 %v1369_v8  ;;  %1127 = vmatprep.subr.bf16.mxu0 %v1370_v9  ;;  %v1386_v25 = vld [vmem:[#allocation6 + $0x70] sm:$0xff]   ;;  %v1390_v29 = vld [vmem:[#allocation6 + $0x78] sm:$0xff]   ;;  %v1400_v37 = vld [vmem:[#allocation6 + $0x140] sm:$0xff]  }
  0x79   : > { %1149 = vmatprep.subr.bf16.mxu1 %v1371_v10  ;;  %v1387_v26 = vld [vmem:[#allocation6 + $0xf0] sm:$0xff]   ;;  %v1391_v30 = vld [vmem:[#allocation6 + $0xf8] sm:$0xff]   ;;  %v1401_v38 = vld [vmem:[#allocation6 + $0x100] sm:$0xff]  }
  0x7a   : > { %v1388_v27 = vld [vmem:[#allocation6 + $0x30] sm:$0xff]   ;;  %v1392_v31 = vld [vmem:[#allocation6 + $0x38] sm:$0xff]   ;;  %v1402_v39 = vld [vmem:[#allocation6 + $0x148] sm:$0xff]  }
  0x7b   : > { %1128 = vmatpush3.bf16.msra.mxu0 %v1372_v11  ;;  %v1389_v28 = vld [vmem:[#allocation6 + $0xb0] sm:$0xff]   ;;  %v1393_v32 = vld [vmem:[#allocation6 + $0xb8] sm:$0xff]   ;;  %v1403_v40 = vld [vmem:[#allocation6 + $0x108] sm:$0xff]  }
  0x7c   : > { %1150 = vmatpush3.bf16.msra.mxu1 %v1373_v12  ;;  %1129 = vmatprep.subr.bf16.mxu0 %v1374_v13  ;;  %v1394_v33 = vld [vmem:[%s1807_s25] ss:$24 sps:$4 sm:$0xff]   ;;  %v1396_v34 = vld [vmem:[%s1807_s25 + $0x4] ss:$24 sps:$4 sm:$0xff]   ;;  %v1418_v48 = vld [vmem:[%s1807_s25 + $0x14] ss:$24 sps:$4 sm:$0xff]  }
  0x7d   : > { %1151 = vmatprep.subr.bf16.mxu1 %v1375_v14  ;;  %v1397_v35 = vld [vmem:[%s1807_s25 + $0x8] ss:$24 sps:$4 sm:$0xff]   ;;  %v1399_v36 = vld [vmem:[%s1807_s25 + $0xc] ss:$24 sps:$4 sm:$0xff]   ;;  %741 = vmatprep.mubr.bf16.mxu0 %v1396_v34  ;;  %v1604_v34 = vmov (!%p1116_p12), 0.0  }
  0x7e   : > { %782 = vmatprep.mubr.bf16.mxu1 %v1399_v36  ;;  %v1404_v41 = vld [vmem:[#allocation6 + $0x150] sm:$0xff]   ;;  %v1406_v43 = vld [vmem:[#allocation6 + $0x158] sm:$0xff]   ;;  %v1408_v45 = vld [vmem:[#allocation6 + $0x160] sm:$0xff]  }
  0x7f   : > { %1130 = vmatpush3.bf16.msra.mxu0 %v1376_v15  ;;  %v1405_v42 = vld [vmem:[#allocation6 + $0x110] sm:$0xff]   ;;  %v1407_v44 = vld [vmem:[#allocation6 + $0x118] sm:$0xff]   ;;  %v1409_v46 = vld [vmem:[#allocation6 + $0x120] sm:$0xff]  }
  0x80   : > { %1152 = vmatpush3.bf16.msra.mxu1 %v1377_v16  ;;  %1131 = vmatprep.subr.bf16.mxu0 %v1378_v17  ;;  %v1410_v47 = vld [vmem:[#allocation6 + $0x168] sm:$0xff]   ;;  %v1412_v50 = vld [vmem:[#allocation6 + $0x170] sm:$0xff]   ;;  %v1414_v52 = vld [vmem:[#allocation6 + $0x178] sm:$0xff]  }
  0x81   : > { %1153 = vmatprep.subr.bf16.mxu1 %v1379_v18  ;;  %v1411_v49 = vld [vmem:[#allocation6 + $0x128] sm:$0xff]   ;;  %v1413_v51 = vld [vmem:[#allocation6 + $0x130] sm:$0xff]   ;;  %v1415_v53 = vld [vmem:[#allocation6 + $0x138] sm:$0xff]  }
  0x82   : > { %v1416_v54 = vld [vmem:[%s1807_s25 + $0x10] ss:$24 sps:$4 sm:$0xff]  }
  0x83   : > { %1132 = vmatpush3.bf16.msra.mxu0 %v1380_v19  ;;  %v870_v36 = vld [vmem:[#allocation8 + $0x20] sm:$0xff] (!%p1116_p12) }
  0x84   : > { %1154 = vmatpush3.bf16.msra.mxu1 %v1381_v20  ;;  %1133 = vmatprep.subr.bf16.mxu0 %v1382_v21 }
  0x85   : > { %1155 = vmatprep.subr.bf16.mxu1 %v1383_v22 }
  0x87   : > { %1134 = vmatpush3.bf16.msra.mxu0 %v1384_v23 }
  0x88   : > { %1156 = vmatpush3.bf16.msra.mxu1 %v1385_v24  ;;  %1135 = vmatprep.subr.bf16.mxu0 %v1386_v25  ;;  %v832_v24 = vld [vmem:[#allocation2] sm:$0x3] }
  0x89   : > { %1157 = vmatprep.subr.bf16.mxu1 %v1387_v26 }
  0x8b   : > { %1136 = vmatpush3.bf16.msra.mxu0 %v1388_v27 }
  0x8c   : > { %1158 = vmatpush3.bf16.msra.mxu1 %v1389_v28  ;;  %1137 = vmatprep.subr.bf16.mxu0 %v1390_v29  ;;  %v866_v28 = vld [vmem:[#allocation8] sm:$0xff] (!%p1116_p12)  ;;  %v867_v29 = vld [vmem:[#allocation8 + $0x8] sm:$0xff] (!%p1116_p12) }
  0x8d   : > { %1159 = vmatprep.subr.bf16.mxu1 %v1391_v30  ;;  %v868_v30 = vld [vmem:[#allocation8 + $0x10] sm:$0xff] (!%p1116_p12) }
  0x8f   : > { %1138 = vmatpush3.bf16.msra.mxu0 %v1392_v31  ;;  %v1602_v31 = vmov (!%p1116_p12), 0.0|0.0  }
  0x90   : > { %1160 = vmatpush3.bf16.msra.mxu1 %v1393_v32  ;;  %1167 = vmatprep.subr.bf16.mxu0 %v1400_v37  ;;  %v1242_v32 = vpack.c.bf16 (!%p1116_p12), %v867_v29, %v866_v28  ;;  %v871_v37 = vld [vmem:[#allocation8 + $0x28] sm:$0xff] (!%p1116_p12) }
  0x92   : > { %742 = vmatmul.mubr.bf16.vlgmr.msra.gmra.mrb[0].mxu0 %v1394_v33  ;;  %v869_v33 = vld [vmem:[#allocation8 + $0x18] sm:$0xff] (!%p1116_p12) }
  0x93   : > { %783 = vmatmul.mubr.bf16.vlgmr.msra.gmra.mrb[0].mxu1 %v1397_v35  ;;  %1168 = vmatpush3.bf16.msra.mxu0 %v1401_v38  ;;  %v1245_v35 = vpack.c.bf16 (!%p1116_p12), %v869_v33, %v868_v30  ;;  %v1248_v38 = vpack.c.bf16 (!%p1116_p12), %v871_v37, %v870_v36 }
  0x94   : > { %1169 = vmatprep.subr.bf16.mxu0 %v1402_v39  ;;  %823 = vmatprep.mubr.bf16.mxu0 %v1418_v48  ;;  %v872_v39 = vld [vmem:[#allocation8 + $0x30] sm:$0xff] (!%p1116_p12)  ;;  %v878_v48 = vld [vmem:[#allocation8 + $0x60] sm:$0xff] (!%p1116_p12) }
  0x97   : > { %1170 = vmatpush3.bf16.msra.mxu0 %v1403_v40  ;;  %v873_v40 = vld [vmem:[#allocation8 + $0x38] sm:$0xff] (!%p1116_p12) }
  0x98   : > { %1171 = vmatprep.subr.bf16.mxu0 %v1404_v41  ;;  %v1251_v41 = vpack.c.bf16 (!%p1116_p12), %v873_v40, %v872_v39 }
  0x9b   : > { %1172 = vmatpush3.bf16.msra.mxu0 %v1405_v42  ;;  %v874_v42 = vld [vmem:[#allocation8 + $0x40] sm:$0xff] (!%p1116_p12) }
  0x9c   : > { %1173 = vmatprep.subr.bf16.mxu0 %v1406_v43  ;;  %v875_v43 = vld [vmem:[#allocation8 + $0x48] sm:$0xff] (!%p1116_p12) }
  0x9f   : > { %1174 = vmatpush3.bf16.msra.mxu0 %v1407_v44  ;;  %v1254_v44 = vpack.c.bf16 (!%p1116_p12), %v875_v43, %v874_v42 }
  0xa0   : > { %1175 = vmatprep.subr.bf16.mxu0 %v1408_v45  ;;  %v876_v45 = vld [vmem:[#allocation8 + $0x50] sm:$0xff] (!%p1116_p12) }
  0xa3   : > { %1176 = vmatpush3.bf16.msra.mxu0 %v1409_v46  ;;  %v877_v46 = vld [vmem:[#allocation8 + $0x58] sm:$0xff] (!%p1116_p12) }
  0xa4   : > { %1177 = vmatprep.subr.bf16.mxu0 %v1410_v47  ;;  %v1257_v47 = vpack.c.bf16 (!%p1116_p12), %v877_v46, %v876_v45 }
  0xa7   : > { %1178 = vmatpush3.bf16.msra.mxu0 %v1411_v49  ;;  %v879_v49 = vld [vmem:[#allocation8 + $0x68] sm:$0xff] (!%p1116_p12) }
  0xa8   : > { %1179 = vmatprep.subr.bf16.mxu0 %v1412_v50  ;;  %v1260_v50 = vpack.c.bf16 (!%p1116_p12), %v879_v49, %v878_v48 }
  0xab   : > { %1180 = vmatpush3.bf16.msra.mxu0 %v1413_v51 }
  0xac   : > { %1181 = vmatprep.subr.bf16.mxu0 %v1414_v52  ;;  %v880_v52 = vld [vmem:[#allocation8 + $0x70] sm:$0xff] (!%p1116_p12) }
  0xaf   : > { %1182 = vmatpush3.bf16.msra.mxu0 %v1415_v53  ;;  %v881_v53 = vld [vmem:[#allocation8 + $0x78] sm:$0xff] (!%p1116_p12) }
  0xb0   : > { %1241 = vmatprep.subr.bf16.mxu0 (!%p1116_p12), %v1602_v31 }
  0xb2   : > { %824 = vmatmul.mubr.bf16.vlgmr.msra.gmra.mrb[4].mxu0 %v1416_v54 }
  0xb3   : > { %1238 = vmatprep.mubr.msk.f32.mxu0 (!%p1116_p12), %vm1603_vm1, %v1604_v34  ;;  %1243 = vmatpush3.bf16.msra.mxu0 (!%p1116_p12), %v1242_v32 }
  0xb4   : > { %1244 = vmatprep.subr.bf16.mxu0 (!%p1116_p12), %v1602_v31 }
  0xb7   : > { %1246 = vmatpush3.bf16.msra.mxu0 (!%p1116_p12), %v1245_v35 }
  0xb8   : > { %1247 = vmatprep.subr.bf16.mxu0 (!%p1116_p12), %v1602_v31 }
  0xbb   : > { %1249 = vmatpush3.bf16.msra.mxu0 (!%p1116_p12), %v1248_v38 }
  0xbc   : > { %1250 = vmatprep.subr.bf16.mxu0 (!%p1116_p12), %v1602_v31 }
  0xbf   : > { %1252 = vmatpush3.bf16.msra.mxu0 (!%p1116_p12), %v1251_v41 }
  0xc0   : > { %1253 = vmatprep.subr.bf16.mxu0 (!%p1116_p12), %v1602_v31 }
  0xc3   : > { %1255 = vmatpush3.bf16.msra.mxu0 (!%p1116_p12), %v1254_v44 }
  0xc4   : > { %1256 = vmatprep.subr.bf16.mxu0 (!%p1116_p12), %v1602_v31 }
  0xc7   : > { %1258 = vmatpush3.bf16.msra.mxu0 (!%p1116_p12), %v1257_v47 }
  0xc8   : > { %1259 = vmatprep.subr.bf16.mxu0 (!%p1116_p12), %v1602_v31 }
  0xcb   : > { %1261 = vmatpush3.bf16.msra.mxu0 (!%p1116_p12), %v1260_v50 }
  0xcc   : > { %1262 = vmatprep.subr.bf16.mxu0 (!%p1116_p12), %v1602_v31 }
 0x165   : > { %v1139_v55 = vpop.f32.mrb[0].mxu0 }
 0x166   : > { %v1161_v56 = vpop.f32.mrb[0].mxu1  ;;  %v1140_v57 = vpop.f32.mrb[1].mxu0 }
 0x167   : > { %v1141_v58 = vadd.f32 %v1140_v57, %v1139_v55  ;;  %v1162_v59 = vpop.f32.mrb[1].mxu1  ;;  %v1142_v60 = vpop.f32.mrb[2].mxu0  ;;  %v1263_v55 = vpack.c.bf16 (!%p1116_p12), %v881_v53, %v880_v52 }
 0x168   : > { %v1163_v61 = vadd.f32 %v1162_v59, %v1161_v56  ;;  %v1164_v62 = vpop.f32.mrb[2].mxu1  ;;  %v1143_v63 = vpop.f32.mrb[3].mxu0  ;;  %v1117_v56 = vld [vmem:[%s1879_s2] ss:$0 sm:$0xff] (!%p1116_p12) }
 0x169   : > { %v1144_v0 = vadd.f32 %v1143_v63, %v1142_v60  ;;  %v1165_v1 = vpop.f32.mrb[3].mxu1  ;;  %1264 = vmatpush3.bf16.msra.mxu0 (!%p1116_p12), %v1263_v55 }
 0x16a   : > { %v785_v2 = vadd.f32 %v1163_v61, %v1141_v58  ;;  %v1166_v3 = vadd.f32 %v1165_v1, %v1164_v62  ;;  %v1118_v58 = vld [vmem:[%s1881_s4] ss:$0 sm:$0xff] (!%p1116_p12) }
 0x16c   : > { %v788_v4 = vadd.f32 %v1166_v3, %v1144_v0 }
 0x185   : > { %v1183_v5 = vpop.f32.mrb[4].mxu0 }
 0x186   : > { %v1184_v6 = vpop.f32.mrb[5].mxu0 }
 0x187   : > { %v1185_v7 = vadd.f32 %v1184_v6, %v1183_v5  ;;  %v1186_v8 = vpop.f32.mrb[6].mxu0 }
 0x188   : > { %v1187_v9 = vpop.f32.mrb[7].mxu0 }
 0x189   : > { %v826_v10 = vadd.f32 %v1185_v7, %v785_v2  ;;  %v1188_v11 = vadd.f32 %v1187_v9, %v1186_v8 }
 0x18b   : > { %v833_v12 = vrot.slane %v826_v10, 4  ;;  %v829_v13 = vadd.f32 %v1188_v11, %v788_v4 }
 0x18d   : > { %v834_v14 = vadd.f32 %v833_v12, %v826_v10  ;;  %v839_v15 = vrot.slane %v829_v13, 4 }
 0x18f   : > { %v835_v16 = vrot.slane %v834_v14, 2  ;;  %v840_v17 = vadd.f32 %v839_v15, %v829_v13 }
 0x191   : > { %v836_v18 = vadd.f32 %v835_v16, %v834_v14  ;;  %v841_v19 = vrot.slane %v840_v17, 2 }
 0x193   : > { %v837_v20 = vrot.slane %v836_v18, 1  ;;  %v842_v21 = vadd.f32 %v841_v19, %v840_v17 }
 0x195   : > { %v843_v22 = vrot.slane %v842_v21, 1  ;;  %v838_v23 = vadd.f32 %v837_v20, %v836_v18 }
 0x196   : > { %855 = sbr.rel (%p1116_p12) target bundleno = 639 (0x27f), region = 60 }
 0x197   : > { %v844_v25 = vadd.f32 %v843_v22, %v842_v21 }
 0x199   : > { %v848_v26 = vsel %vm847_vm0, %v844_v25, %v838_v23 }
 0x19a   : > { %v850_v27 = vadd.f32 %v848_v26, %v832_v24 }
 0x19c   : > { %851 = vst [vmem:[#allocation2] sm:$0x3] %v850_v27 }
 0x1a3   : > { %v856_v51 = vld [vmem:[#allocation2] sm:$0x3] }
 0x1a4   : > { %v857_v54 = vmul.f32 0.0625, %v856_v51 }
 0x1a6   : > { %v865_v57 = vadd.f32 %v1117_v56, %v857_v54 }
 0x1a8   : > { %1239 = vmatmul.mubr.f32.vlgmr.msra.gmra.mrb[0].mxu0 %v865_v57 }
 0x27b   : > { %v955_v59 = vpop.f32.mrb[0].mxu0 }
 0x27c   : > { %v956_v60 = vadd.f32 %v1118_v58, %v955_v59  ;;  %v1240_v61 = vpop.f32.mrb[1].mxu0 }
 0x27e   : > { %959 = vst [vmem:[#allocation9] sm:$0x3] %v956_v60 }
 0x27f PF: > { %p1833_p1 = scmp.eq.s32.totalorder %s1052_s24, 1  ;;  %s1605_s17 = smov [#allocation9]  }
 0x280   : > { %s969_s30 = sshll.u32 %s1605_s17, 4  ;;  %s970_s30 = int_to_ptr.vmem [resolvable:$true] %s969_s30 }
 0x281   : > { %s1505_s29 = scalar_lea.vmem %s970_s30, 32  ;;  %p1512_p11 = scmp.lt.s32.totalorder %s970_s30, %s970_s30 }
 0x282   : > { %p1506_p3 = scmp.ne.s32.totalorder %s970_s30, %s1505_s29  ;;  %p1513_p2 = scmp.lt.s32.totalorder %s1505_s29, %s1505_s29 }
 0x284   : > { %p1507_p6 = pnand %p1506_p3, %p1833_p1  ;;  %p1514_p5 = por %p1513_p2, %p1512_p11 }
 0x286   : > { %p1508_p0 = pneg %p1507_p6 }
 0x288   : > { %p1515_p9 = pnand %p1514_p5, %p1508_p0 }
 0x28a   : > { %1518 = shalt.err (!%p1515_p9)
}
 0x28b   : > { %s1519_s24 = scalar_lea.hbm %s1882_s5, 32 }
 0x28c   : > { %p1520_p10 = scmp.ne.s32.totalorder %s1882_s5, %s1519_s24  ;;  %p1525_p7 = scmp.lt.u32.totalorder %s1519_s24, %s1882_s5 }
 0x28e   : > { %p1521_p13 = pnand %p1520_p10, %p1833_p1 }
 0x290   : > { %p1522_p4 = pneg %p1521_p13 }
 0x292   : > { %p1527_p8 = pnand %p1525_p7, %p1522_p4 }
 0x294   : > { %1530 = shalt.err (!%p1527_p8)
}
 0x295   : > { %1279 = dma.vmem_to_hbm [thread:$0]  (%p1833_p1), %s970_s30, 32, %s1882_s5, [#allocation5]  }
 0x296   : > { %1564 = dma.done.wait (%p1833_p1), [#allocation5], 32  }
 0x297   : > { %1566 = vsyncadd (%p1833_p1), [#allocation5], 4294967264 }
 0x298 PF: > { %s20_s23 = sadd.s32 1, %s1589_s23   ;;  %s1894_s16 = smov %s1774_s18 }
 0x299   : > { %p17_p12 = scmp.ge.s32.totalorder %s20_s23, 4   ;;  %s1895_s18 = smov %s1573_s19 }
 0x29a   : > { %s1896_s19 = smov %s1577_s20  ;;  %s1897_s20 = smov %s1894_s16 }
 0x29b   : > { %s1898_s21 = smov %s1585_s22  ;;  %s1899_s22 = smov %s1901_s12 }
 0x29c   :  { %19 = sbr.rel (!%p17_p12) target bundleno = 6 (0x6), region = 94 }
 0x2a3   :  { %982 = vsyncpa [#allocation4], 1 }
 0x2a4   :  { %984 = vsyncpa [#allocation4 + $0x1], 1 }
 0x2a5   :  { %985 = vsyncpa [#allocation7], 1 }
 0x2a6   :  { %986 = vsyncpa [#allocation5], 1 }
 0x2a7   :  { %988 = vsyncpa [#allocation5 + $0x1], 1 }

</bundles_post_ra>
